<compile_context>
chip_gen: v7x
topology: tpu7x:2x2x1
jax: 0.10.0
libtpu: 0.0.40
codegen_flags: <defaults>
</compile_context>

<pallas_src>
import jax
import jax.numpy as jnp
from jax.experimental import pallas as pl
from jax.experimental.pallas import tpu as pltpu  # noqa: F401  (kept for scaled-up variants)


# ----------------------------------------------------------------------------
# Parameter construction (PyTorch-natural layouts) and one-time kernel packing
# ----------------------------------------------------------------------------
def init_params(key, cin=4, hidden=32, nclass=8, cout=8):
    k1, k2, k3, k4, k5, k6 = jax.random.split(key, 6)
    return {
        "t_w1": jax.random.normal(k1, (cin, hidden), jnp.float32) * 0.1,
        "t_b1": jax.random.normal(k2, (1, hidden), jnp.float32) * 0.1,
        "t_w2": jax.random.normal(k3, (hidden, nclass), jnp.float32) * 0.1,
        "t_b2": jax.random.normal(k4, (1, nclass), jnp.float32) * 0.1,
        "y_w": jax.random.normal(k5, (cout, cin, 3, 3), jnp.float32) * 0.1,
        "y_b": jax.random.normal(k6, (cout,), jnp.float32) * 0.1,
    }


def pack_params(params):
    """One-time repack into kernel (feature-major) layouts.

    Stacked weight rows 0:hidden = w1.T placed in the center-tap column block
    (kh=kw=1 -> columns 4C:5C) of the (kh, kw, cin)-ordered im2col axis, zeros
    elsewhere; rows hidden: = conv weight reshaped to (Cout, 9C).
    """
    w1, b1 = params["t_w1"], params["t_b1"]
    w2, b2 = params["t_w2"], params["t_b2"]
    wc, bc = params["y_w"], params["y_b"]
    cin, hidden = w1.shape
    nclass = w2.shape[1]
    cout = wc.shape[0]
    assert hidden % 8 == 0, "hidden must be sublane-aligned for the free row split"
    K = 9 * cin

    w_all = jnp.zeros((hidden + cout, K), jnp.float32)
    w_all = w_all.at[:hidden, 4 * cin:5 * cin].set(w1.T)
    w_all = w_all.at[hidden:, :].set(
        jnp.transpose(wc, (0, 2, 3, 1)).reshape(cout, K))
    b_all = jnp.concatenate([b1.reshape(hidden, 1), bc.reshape(cout, 1)], axis=0)
    return {
        "w_all": w_all,                 # (hidden+Cout, 9C)
        "b_all": b_all,                 # (hidden+Cout, 1)
        "w2_t": w2.T,                   # (nclass, hidden)
        "b2_t": b2.reshape(nclass, 1),  # (nclass, 1)
    }


# ----------------------------------------------------------------------------
# iCoDeModel forward: both branches fused in one single-step pallas_call
# ----------------------------------------------------------------------------
@jax.jit
def icode_forward(x_nchw, packed):
    B, C, H, W = x_nchw.shape
    S = H * W
    N = B * S                                            # lane width (512)
    w_all, b_all = packed["w_all"], packed["b_all"]
    w2_t, b2_t = packed["w2_t"], packed["b2_t"]
    nclass, hidden = w2_t.shape
    cout = w_all.shape[0] - hidden
    assert w_all.shape[1] == 9 * C

    # im2col glue, feature-major with batch folded into lanes: (9C, B*S),
    # row order (kh, kw, cin) matching the packed weight.
    x_cb = jnp.transpose(x_nchw, (1, 0, 2, 3))           # (C, B, H, W), ~4 KiB
    xp = jnp.pad(x_cb, ((0, 0), (0, 0), (1, 1), (1, 1)))
    taps = [xp[:, :, kh:kh + H, kw:kw + W].reshape(C, N)
            for kh in range(3) for kw in range(3)]
    xcol = jnp.concatenate(taps, axis=0)                 # (9C, B*S)

    def kernel(xcol_ref, wall_ref, ball_ref, w2_ref, b2_ref, t_ref, y_ref):
        # One MXU pass produces both branches' pre-activations.
        z = jnp.dot(wall_ref[...], xcol_ref[...],
                    preferred_element_type=jnp.float32)  # (hidden+Cout, N)
        z = z + ball_ref[...]

        # ---- testra: MLP hidden -> logits -> softmax over class rows ----
        h = jnp.maximum(z[:hidden, :], 0.0)              # ReLU, static row slice
        logits = jnp.dot(w2_ref[...], h,
                         preferred_element_type=jnp.float32) + b2_ref[...]
        m = jnp.max(logits, axis=0, keepdims=True)
        e = jnp.exp(logits - m)
        s = jnp.sum(e, axis=0, keepdims=True)
        t_ref[...] = e / s                               # exact division

        # ---- yolo: conv pre-activation rows -> LeakyReLU(0.1) ----
        y = z[hidden:, :]
        y_ref[...] = jnp.maximum(y, 0.1 * y)

    t_out, y_out = pl.pallas_call(
        kernel,
        out_shape=(
            jax.ShapeDtypeStruct((nclass, N), jnp.float32),
            jax.ShapeDtypeStruct((cout, N), jnp.float32),
        ),
    )(xcol, w_all, b_all, w2_t, b2_t)

    # testra stays lane-dense: (B, nclass, S) with softmax over axis 1.
    testra_out = jnp.transpose(t_out.reshape(nclass, B, S), (1, 0, 2))
    # yolo back to NCHW.
    yolo_out = jnp.transpose(y_out.reshape(cout, B, H, W), (1, 0, 2, 3))
    return testra_out, yolo_out


if __name__ == "__main__":
    key = jax.random.PRNGKey(0)
    kx, kp = jax.random.split(key)

    B, C, H, W = 2, 4, 16, 16
    HIDDEN, NCLASS, COUT = 32, 8, 8
    x = jax.random.normal(kx, (B, C, H, W), jnp.float32)
    params = init_params(kp, cin=C, hidden=HIDDEN, nclass=NCLASS, cout=COUT)
    packed = pack_params(params)          # one-time weight repack (outside jit)

    testra_out, yolo_out = icode_forward(x, packed)
    jax.block_until_ready((testra_out, yolo_out))

    # shape / sanity checks
    assert testra_out.shape == (B, NCLASS, H * W)
    assert yolo_out.shape == (B, COUT, H, W)
    assert bool(jnp.all(jnp.isfinite(testra_out)))
    assert bool(jnp.all(jnp.isfinite(yolo_out)))
    # exact-division softmax: class probabilities sum tightly to 1
    assert bool(jnp.allclose(jnp.sum(testra_out, axis=1), 1.0, atol=1e-3))

    # yolo branch vs XLA conv reference (tolerance = MXU f32 default precision)
    ref = jax.lax.conv_general_dilated(
        x, params["y_w"], window_strides=(1, 1), padding="SAME",
        dimension_numbers=("NCHW", "OIHW", "NCHW"))
    ref = ref + params["y_b"].reshape(1, -1, 1, 1)
    ref = jnp.maximum(ref, 0.1 * ref)
    assert bool(jnp.allclose(yolo_out, ref, rtol=1e-2, atol=1e-2))

    # testra branch vs plain-JAX reference
    tokens = jnp.transpose(x, (0, 2, 3, 1)).reshape(B, H * W, C)
    h_ref = jnp.maximum(tokens @ params["t_w1"] + params["t_b1"], 0.0)
    logits_ref = h_ref @ params["t_w2"] + params["t_b2"]
    probs_ref = jnp.transpose(jax.nn.softmax(logits_ref, axis=-1), (0, 2, 1))
    assert bool(jnp.allclose(testra_out, probs_ref, rtol=1e-2, atol=1e-2))

    print("KERNEL_OK")
</pallas_src>

<mosaic_0001>
module attributes {stable_mosaic.version = 11 : i64} {
  func.func @kernel(%arg0: memref<36x512xf32, #tpu.memory_space<vmem>>, %arg1: memref<40x36xf32, #tpu.memory_space<vmem>>, %arg2: memref<40x1xf32, #tpu.memory_space<vmem>>, %arg3: memref<8x32xf32, #tpu.memory_space<vmem>>, %arg4: memref<8x1xf32, #tpu.memory_space<vmem>>, %arg5: memref<8x512xf32, #tpu.memory_space<vmem>>, %arg6: memref<8x512xf32, #tpu.memory_space<vmem>>) attributes {dimension_semantics = [], scalar_prefetch = 0 : i64, scratch_operands = 0 : i64, tpu.core_type = #tpu.core_type<tc>} {
    %c0 = arith.constant 0 : index
    %c0_0 = arith.constant 0 : index
    %0 = vector.load %arg1[%c0, %c0_0] : memref<40x36xf32, #tpu.memory_space<vmem>>, vector<40x36xf32>
    %c0_1 = arith.constant 0 : index
    %c0_2 = arith.constant 0 : index
    %1 = vector.load %arg0[%c0_1, %c0_2] : memref<36x512xf32, #tpu.memory_space<vmem>>, vector<36x512xf32>
    %cst = arith.constant dense<0.000000e+00> : vector<40x512xf32>
    %2 = tpu.matmul %0, %1, %cst {dimension_numbers = #tpu.dot_dimension_numbers<[1], [0], [0], [1], [0, 0, 1, 1], [], []>} : vector<40x36xf32>, vector<36x512xf32>, vector<40x512xf32> -> vector<40x512xf32>
    %c0_3 = arith.constant 0 : index
    %c0_4 = arith.constant 0 : index
    %3 = vector.load %arg2[%c0_3, %c0_4] : memref<40x1xf32, #tpu.memory_space<vmem>>, vector<40x1xf32>
    %4 = vector.broadcast %3 : vector<40x1xf32> to vector<40x512xf32>
    %5 = arith.addf %2, %4 : vector<40x512xf32>
    %6 = vector.extract_strided_slice %5 {offsets = [0, 0], sizes = [32, 512], strides = [1, 1]} : vector<40x512xf32> to vector<32x512xf32>
    %cst_5 = arith.constant 0.000000e+00 : f32
    %7 = vector.broadcast %cst_5 : f32 to vector<32x512xf32>
    %8 = arith.maximumf %6, %7 : vector<32x512xf32>
    %c0_6 = arith.constant 0 : index
    %c0_7 = arith.constant 0 : index
    %9 = vector.load %arg3[%c0_6, %c0_7] : memref<8x32xf32, #tpu.memory_space<vmem>>, vector<8x32xf32>
    %cst_8 = arith.constant dense<0.000000e+00> : vector<8x512xf32>
    %10 = tpu.matmul %9, %8, %cst_8 {dimension_numbers = #tpu.dot_dimension_numbers<[1], [0], [0], [1], [0, 0, 1, 1], [], []>} : vector<8x32xf32>, vector<32x512xf32>, vector<8x512xf32> -> vector<8x512xf32>
    %c0_9 = arith.constant 0 : index
    %c0_10 = arith.constant 0 : index
    %11 = vector.load %arg4[%c0_9, %c0_10] : memref<8x1xf32, #tpu.memory_space<vmem>>, vector<8x1xf32>
    %12 = vector.broadcast %11 : vector<8x1xf32> to vector<8x512xf32>
    %13 = arith.addf %10, %12 : vector<8x512xf32>
    %cst_11 = arith.constant dense<0xFF800000> : vector<512xf32>
    %14 = vector.multi_reduction <maximumf>, %13, %cst_11 [0] : vector<8x512xf32> to vector<512xf32>
    %15 = vector.shape_cast %14 : vector<512xf32> to vector<1x512xf32>
    %16 = vector.broadcast %15 : vector<1x512xf32> to vector<8x512xf32>
    %17 = arith.subf %13, %16 : vector<8x512xf32>
    %18 = math.exp %17 : vector<8x512xf32>
    %cst_12 = arith.constant dense<0.000000e+00> : vector<512xf32>
    %19 = vector.multi_reduction <add>, %18, %cst_12 [0] : vector<8x512xf32> to vector<512xf32>
    %20 = vector.shape_cast %19 : vector<512xf32> to vector<1x512xf32>
    %21 = vector.broadcast %20 : vector<1x512xf32> to vector<8x512xf32>
    %22 = arith.divf %18, %21 : vector<8x512xf32>
    %c0_13 = arith.constant 0 : index
    %c0_14 = arith.constant 0 : index
    %23 = vector.load %arg5[%c0_13, %c0_14] : memref<8x512xf32, #tpu.memory_space<vmem>>, vector<8x512xf32>
    tpu.vector_store %arg5[%c0_13, %c0_14], %22 {strides = array<i32>} : memref<8x512xf32, #tpu.memory_space<vmem>>, vector<8x512xf32>,
    %24 = vector.extract_strided_slice %5 {offsets = [32, 0], sizes = [8, 512], strides = [1, 1]} : vector<40x512xf32> to vector<8x512xf32>
    %cst_15 = arith.constant 1.000000e-01 : f32
    %25 = vector.broadcast %cst_15 : f32 to vector<8x512xf32>
    %26 = arith.mulf %25, %24 : vector<8x512xf32>
    %27 = arith.maximumf %24, %26 : vector<8x512xf32>
    %c0_16 = arith.constant 0 : index
    %c0_17 = arith.constant 0 : index
    %28 = vector.load %arg6[%c0_16, %c0_17] : memref<8x512xf32, #tpu.memory_space<vmem>>, vector<8x512xf32>
    tpu.vector_store %arg6[%c0_16, %c0_17], %27 {strides = array<i32>} : memref<8x512xf32, #tpu.memory_space<vmem>>, vector<8x512xf32>,
    return
  }
}

</mosaic_0001>

<bundles_post_ra>
// kernel: icode_forward.1
= control target key start
LH: loop header
LB: loop body
LE: loop exit
PB: predicated region body
PF: predicated region fallthrough
CT: control target
= control target key end

     0   :  { %v661_v7 = vmov 0.0   ;;  %v662_v13 = vmov 0   ;;  %vm94_vm0 = vcmask 1043456   ;;  %vm78_vm1 = vcmask 293888   ;;  %s845_s0 = inlined_call_operand.vmem [shape: f32[36,512], index: 0, kind: input, shape index: {}]   ;;  %s846_s1 = inlined_call_operand.vmem [shape: f32[40,36], index: 1, kind: input, shape index: {}]   ;;  %s847_s2 = inlined_call_operand.vmem [shape: f32[40,1], index: 2, kind: input, shape index: {}]   ;;  %s848_s3 = inlined_call_operand.vmem [shape: f32[8,32], index: 3, kind: input, shape index: {}]   ;;  %s849_s4 = inlined_call_operand.vmem [shape: f32[8,1], index: 4, kind: input, shape index: {}]   ;;  %s850_s5 = inlined_call_operand.hbm [shape: f32[8,512], index: 5, kind: output, shape index: {0}]   ;;  %s851_s6 = inlined_call_operand.vmem [shape: f32[8,512], index: 6, kind: output, shape index: {1}]  }
   0x1   :  { %v29_v0 = vld [vmem:[%s845_s0 + $0x8] sm:$0xff]  ;;  %v31_v2 = vld [vmem:[%s845_s0 + $0x18] sm:$0xff]  ;;  %v28_v5 = vld [vmem:[%s845_s0] sm:$0xff]  ;;  %171 = vmatprep.mubr.f32.mxu0 %v661_v7  ;;  %266 = vmatprep.mubr.f32.mxu1 %v661_v7 }
   0x2   :  { %v33_v1 = vld [vmem:[%s845_s0 + $0x28] sm:$0xff]  ;;  %v35_v4 = vld [vmem:[%s845_s0 + $0x38] sm:$0xff]  ;;  %v32_v6 = vld [vmem:[%s845_s0 + $0x20] sm:$0xff]  ;;  %619 = vset.pattern.permute.xlu0 %v662_v13  ;;  %620 = vset.pattern.permute.xlu1 %v662_v13 }
   0x3   :  { %v584_v3 = vpack.c.bf16 %v33_v1, %v29_v0  ;;  %v592_v8 = vpack.c.bf16 %v35_v4, %v31_v2  ;;  %v586_v9 = vpack.c.bf16 %v32_v6, %v28_v5  ;;  %v30_v10 = vld [vmem:[%s845_s0 + $0x10] sm:$0xff]  ;;  %v37_v12 = vld [vmem:[%s845_s0 + $0x48] sm:$0xff]  ;;  %v39_v16 = vld [vmem:[%s845_s0 + $0x58] sm:$0xff] }
   0x4   :  { %v34_v11 = vld [vmem:[%s845_s0 + $0x30] sm:$0xff]  ;;  %v41_v15 = vld [vmem:[%s845_s0 + $0x68] sm:$0xff]  ;;  %v43_v17 = vld [vmem:[%s845_s0 + $0x78] sm:$0xff] }
   0x5   :  { %585 = vmatprep.subr.bf16.mxu0 %v584_v3  ;;  %v594_v14 = vpack.c.bf16 %v34_v11, %v30_v10  ;;  %593 = vmatprep.subr.bf16.mxu1 %v592_v8  ;;  %v588_v18 = vpack.c.bf16 %v41_v15, %v37_v12  ;;  %v596_v19 = vpack.c.bf16 %v43_v17, %v39_v16  ;;  %v36_v20 = vld [vmem:[%s845_s0 + $0x40] sm:$0xff]  ;;  %v38_v22 = vld [vmem:[%s845_s0 + $0x50] sm:$0xff]  ;;  %v45_v26 = vld [vmem:[%s845_s0 + $0x88] sm:$0xf] }
   0x6   :  { %587 = vmatpush1.bf16.msra.mxu0 %v586_v9  ;;  %v40_v21 = vld [vmem:[%s845_s0 + $0x60] sm:$0xff]  ;;  %v42_v24 = vld [vmem:[%s845_s0 + $0x70] sm:$0xff]  ;;  %v47_v27 = vld [vmem:[%s845_s0 + $0x98] sm:$0xf] }
   0x7   :  { %595 = vmatpush1.bf16.msra.mxu1 %v594_v14  ;;  %v590_v23 = vpack.c.bf16 %v40_v21, %v36_v20  ;;  %589 = vmatprep.subr.bf16.mxu0 %v588_v18  ;;  %v598_v25 = vpack.c.bf16 %v42_v24, %v38_v22  ;;  %v48_v28 = vld [vmem:[%s847_s2] sm:$0xff]  ;;  %v50_v30 = vld [vmem:[%s847_s2 + $0x10] sm:$0xff] }
   0x8   :  { %597 = vmatprep.subr.bf16.mxu1 %v596_v19  ;;  %v44_v29 = vld [vmem:[%s845_s0 + $0x80] sm:$0xf]  ;;  %v46_v31 = vld [vmem:[%s845_s0 + $0x90] sm:$0xf]  ;;  %55 = vperm.xlu0 %619, %v48_v28  }
   0x9   :  { %v23_v32 = vld [vmem:[%s846_s1] sm:$0xff] }
   0xa   :  { %591 = vmatpush1.bf16.msra.mxu0 %v590_v23 }
   0xb   :  { %599 = vmatpush1.bf16.msra.mxu1 %v598_v25  ;;  %568 = vmatprep.subr.msk.mxu0 %vm94_vm0, %v45_v26 }
   0xc   :  { %575 = vmatprep.subr.msk.mxu1 %vm94_vm0, %v47_v27 }
   0xd   :  { %12 = vsyncpa [#allocation3], 0  ;;  %65 = vperm.xlu1 %620, %v50_v30   ;;  %v49_v33 = vld [vmem:[%s847_s2 + $0x8] sm:$0xff]  ;;  %v51_v34 = vld [vmem:[%s847_s2 + $0x18] sm:$0xff]  ;;  %vm320_vm2 = vcmask 261120  }
   0xe   :  { %569 = vmatpush1.msk.msra.mxu0 %vm94_vm0, %v44_v29  ;;  %v24_v35 = vld [vmem:[%s846_s1 + $0x8] sm:$0xff]  ;;  %60 = vperm.xlu0 %619, %v49_v33   ;;  %v314_v36 = vld [vmem:[%s849_s4] sm:$0xff]  ;;  %v25_v38 = vld [vmem:[%s846_s1 + $0x10] sm:$0xff] }
   0xf   :  { %576 = vmatpush1.msk.msra.mxu1 %vm94_vm0, %v46_v31  ;;  %570 = vmatmul.mubr.msk.f32.vlgmr.msra.gmra.mrb[0].mxu0 %vm78_vm1, %v23_v32  ;;  %v52_v37 = vld [vmem:[%s847_s2 + $0x20] sm:$0xff]  ;;  %v26_v39 = vld [vmem:[%s846_s1 + $0x18] sm:$0xff] }
  0x10   :  { %577 = vmatmul.mubr.msk.f32.vlgmr.msra.gmra.mrb[0].mxu1 %vm78_vm1, %v23_v32  ;;  %177 = vmatprep.mubr.f32.mxu0 %v661_v7  ;;  %v27_v40 = vld [vmem:[%s846_s1 + $0x20] sm:$0xff] }
  0x11   :  { %272 = vmatprep.mubr.f32.mxu1 %v661_v7  ;;  %70 = vperm.xlu1 %620, %v51_v34  }
  0x12   :  { %317 = vperm.xlu0 %619, %v314_v36  }
  0x13   :  { %571 = vmatmul.mubr.msk.f32.gmra.mrb[2].mxu0 %vm78_vm1, %v24_v35 }
  0x14   :  { %578 = vmatmul.mubr.msk.f32.gmra.mrb[2].mxu1 %vm78_vm1, %v24_v35  ;;  %183 = vmatprep.mubr.f32.mxu0 %v661_v7 }
  0x15   :  { %278 = vmatprep.mubr.f32.mxu1 %v661_v7  ;;  %75 = vperm.xlu1 %620, %v52_v37  }
  0x17   :  { %572 = vmatmul.mubr.msk.f32.gmra.mrb[4].mxu0 %vm78_vm1, %v25_v38 }
  0x18   :  { %579 = vmatmul.mubr.msk.f32.gmra.mrb[4].mxu1 %vm78_vm1, %v25_v38  ;;  %189 = vmatprep.mubr.f32.mxu0 %v661_v7 }
  0x19   :  { %284 = vmatprep.mubr.f32.mxu1 %v661_v7 }
  0x1b   :  { %573 = vmatmul.mubr.msk.f32.gmra.mrb[6].mxu0 %vm78_vm1, %v26_v39 }
  0x1c   :  { %580 = vmatmul.mubr.msk.f32.gmra.mrb[6].mxu1 %vm78_vm1, %v26_v39  ;;  %195 = vmatprep.mubr.f32.mxu0 %v661_v7 }
  0x1d   :  { %290 = vmatprep.mubr.f32.mxu1 %v661_v7 }
  0x1f   :  { %574 = vmatmul.mubr.msk.f32.gmra.mrb[8].mxu0 %vm78_vm1, %v27_v40 }
  0x20   :  { %581 = vmatmul.mubr.msk.f32.gmra.mrb[8].mxu1 %vm78_vm1, %v27_v40  ;;  %388 = vmatprep.mubr.f32.mxu0 %v661_v7 }
  0x21   :  { %459 = vmatprep.mubr.f32.mxu1 %v661_v7 }
  0x87   :  { %v56_v41 = vpop.permute.xlu0 %55 }
  0x8c   :  { %v66_v47 = vpop.permute.xlu1 %65 }
  0x8d   :  { %v61_v48 = vpop.permute.xlu0 %60 }
  0x90   :  { %v71_v10 = vpop.permute.xlu1 %70 }
  0x94   :  { %v76_v29 = vpop.permute.xlu1 %75 }
  0xe2   :  { %v173_v42 = vpop.f32.mrb[0].mxu0 }
  0xe3   :  { %v268_v43 = vpop.f32.mrb[0].mxu1  ;;  %v175_v44 = vpop.f32.mrb[1].mxu0  ;;  %v174_v46 = vadd.f32 %v173_v42, %v56_v41 }
  0xe4   :  { %v270_v45 = vpop.f32.mrb[1].mxu1  ;;  %v269_v49 = vadd.f32 %v268_v43, %v56_v41  ;;  %v176_v50 = vadd.f32 %v175_v44, %v56_v41 }
  0xe5   :  { %v271_v52 = vadd.f32 %v270_v45, %v56_v41  ;;  %v297_v59 = vmax.f32 %v174_v46, 0.0 }
  0xe6   :  { %v179_v51 = vpop.f32.mrb[2].mxu0  ;;  %v299_v62 = vmax.f32 %v269_v49, 0.0  ;;  %v298_v63 = vmax.f32 %v176_v50, 0.0 }
  0xe7   :  { %v180_v53 = vadd.f32 %v179_v51, %v61_v48  ;;  %v274_v54 = vpop.f32.mrb[2].mxu1  ;;  %v181_v55 = vpop.f32.mrb[3].mxu0  ;;  %v300_v3 = vmax.f32 %v271_v52, 0.0  ;;  %v313_v51 = vld [vmem:[%s848_s3] sm:$0xff] }
  0xe8   :  { %v275_v56 = vadd.f32 %v274_v54, %v61_v48  ;;  %v182_v57 = vadd.f32 %v181_v55, %v61_v48  ;;  %v276_v58 = vpop.f32.mrb[3].mxu1  ;;  %v318_v55 = vpop.permute.xlu0 %317 }
  0xe9   :  { %v301_v60 = vmax.f32 %v180_v53, 0.0  ;;  %v277_v61 = vadd.f32 %v276_v58, %v61_v48 }
  0xea   :  { %v303_v0 = vmax.f32 %v275_v56, 0.0  ;;  %v302_v1 = vmax.f32 %v182_v57, 0.0  ;;  %v185_v2 = vpop.f32.mrb[4].mxu0 }
  0xeb   :  { %v602_v4 = vpack.c.bf16 %v301_v60, %v297_v59  ;;  %v304_v5 = vmax.f32 %v277_v61, 0.0  ;;  %v280_v6 = vpop.f32.mrb[4].mxu1  ;;  %v187_v7 = vpop.f32.mrb[5].mxu0  ;;  %v186_v13 = vadd.f32 %v185_v2, %v66_v47 }
  0xec   :  { %v610_v8 = vpack.c.bf16 %v303_v0, %v299_v62  ;;  %v600_v9 = vpack.c.bf16 %v302_v1, %v298_v63  ;;  %v282_v11 = vpop.f32.mrb[5].mxu1  ;;  %v281_v14 = vadd.f32 %v280_v6, %v66_v47  ;;  %v188_v15 = vadd.f32 %v187_v7, %v66_v47 }
  0xed   :  { %v608_v12 = vpack.c.bf16 %v304_v5, %v300_v3  ;;  %v283_v17 = vadd.f32 %v282_v11, %v66_v47  ;;  %v305_v24 = vmax.f32 %v186_v13, 0.0 }
  0xee   :  { %v191_v16 = vpop.f32.mrb[6].mxu0  ;;  %601 = vmatprep.subr.bf16.mxu0 %v600_v9  ;;  %v307_v27 = vmax.f32 %v281_v14, 0.0  ;;  %v306_v28 = vmax.f32 %v188_v15, 0.0 }
  0xef   :  { %v192_v18 = vadd.f32 %v191_v16, %v71_v10  ;;  %v286_v19 = vpop.f32.mrb[6].mxu1  ;;  %609 = vmatprep.subr.bf16.mxu1 %v608_v12  ;;  %v193_v20 = vpop.f32.mrb[7].mxu0  ;;  %603 = vmatpush1.bf16.msra.mxu0 %v602_v4  ;;  %v308_v33 = vmax.f32 %v283_v17, 0.0 }
  0xf0   :  { %v287_v21 = vadd.f32 %v286_v19, %v71_v10  ;;  %v194_v22 = vadd.f32 %v193_v20, %v71_v10  ;;  %v288_v23 = vpop.f32.mrb[7].mxu1  ;;  %611 = vmatpush1.bf16.msra.mxu1 %v610_v8 }
  0xf1   :  { %v309_v25 = vmax.f32 %v192_v18, 0.0  ;;  %v289_v26 = vadd.f32 %v288_v23, %v71_v10 }
  0xf2   :  { %v311_v30 = vmax.f32 %v287_v21, 0.0  ;;  %v310_v31 = vmax.f32 %v194_v22, 0.0  ;;  %v197_v32 = vpop.f32.mrb[8].mxu0 }
  0xf3   :  { %v606_v34 = vpack.c.bf16 %v309_v25, %v305_v24  ;;  %v312_v35 = vmax.f32 %v289_v26, 0.0  ;;  %v198_v36 = vadd.f32 %v197_v32, %v76_v29  ;;  %v292_v37 = vpop.f32.mrb[8].mxu1  ;;  %v199_v38 = vpop.f32.mrb[9].mxu0 }
  0xf4   :  { %v614_v39 = vpack.c.bf16 %v311_v30, %v307_v27  ;;  %v604_v40 = vpack.c.bf16 %v310_v31, %v306_v28  ;;  %v293_v41 = vadd.f32 %v292_v37, %v76_v29  ;;  %v200_v42 = vadd.f32 %v199_v38, %v76_v29  ;;  %v294_v43 = vpop.f32.mrb[9].mxu1 }
  0xf5   :  { %v612_v44 = vpack.c.bf16 %v312_v35, %v308_v33  ;;  %v538_v45 = vmul.f32 0.1, %v198_v36  ;;  %v295_v46 = vadd.f32 %v294_v43, %v76_v29 }
  0xf6   :  { %v540_v47 = vmul.f32 0.1, %v293_v41  ;;  %v539_v48 = vmul.f32 0.1, %v200_v42  ;;  %605 = vmatprep.subr.bf16.mxu0 %v604_v40 }
  0xf7   :  { %v542_v49 = vmax.f32 %v198_v36, %v538_v45  ;;  %v541_v50 = vmul.f32 0.1, %v295_v46  ;;  %613 = vmatprep.subr.bf16.mxu1 %v612_v44  ;;  %607 = vmatpush1.bf16.msra.mxu0 %v606_v34 }
  0xf8   :  { %v544_v52 = vmax.f32 %v293_v41, %v540_v47  ;;  %v543_v53 = vmax.f32 %v200_v42, %v539_v48  ;;  %615 = vmatpush1.bf16.msra.mxu1 %v614_v39 }
  0xf9   :  { %546 = vst [vmem:[%s851_s6] sm:$0xff] %v542_v49  ;;  %v545_v54 = vmax.f32 %v295_v46, %v541_v50 }
  0xfa   :  { %548 = vst [vmem:[%s851_s6 + $0x10] sm:$0xff] %v544_v52  ;;  %547 = vst [vmem:[%s851_s6 + $0x8] sm:$0xff] %v543_v53  ;;  %582 = vmatmul.mubr.msk.f32.vlgmr.msra.gmra.mrb[10].mxu0 %vm320_vm2, %v313_v51 }
  0xfb   :  { %549 = vst [vmem:[%s851_s6 + $0x18] sm:$0xff] %v545_v54  ;;  %583 = vmatmul.mubr.msk.f32.vlgmr.msra.gmra.mrb[10].mxu1 %vm320_vm2, %v313_v51  ;;  %s663_s6 = smov [#allocation2]  }
  0xfc   :  { %s556_s16 = sshll.u32 %s663_s6, 4  ;;  %s557_s16 = int_to_ptr.vmem [resolvable:$true] %s556_s16 }
  0xfd   :  { %s637_s17 = scalar_lea.vmem %s557_s16, 512  ;;  %p642_p1 = scmp.lt.s32.totalorder %s557_s16, %s557_s16 }
  0xfe   :  { %p638_p0 = scmp.ne.s32.totalorder %s557_s16, %s637_s17  ;;  %p643_p2 = scmp.lt.s32.totalorder %s637_s17, %s637_s17 }
 0x100   :  { %p644_p3 = por %p643_p2, %p642_p1 }
 0x102   :  { %p645_p4 = pnand %p644_p3, %p638_p0 }
 0x1cd   :  { %v390_v56 = vpop.f32.mrb[10].mxu0 }
 0x1ce   :  { %v391_v57 = vadd.f32 %v390_v56, %v318_v55  ;;  %v461_v58 = vpop.f32.mrb[10].mxu1  ;;  %v392_v59 = vpop.f32.mrb[11].mxu0 }
 0x1cf   :  { %v462_v60 = vadd.f32 %v461_v58, %v318_v55  ;;  %v393_v61 = vadd.f32 %v392_v59, %v318_v55  ;;  %v463_v62 = vpop.f32.mrb[11].mxu1 }
 0x1d0   :  { %v466_v63 = vrot.slane %v391_v57, 4  ;;  %v464_v0 = vadd.f32 %v463_v62, %v318_v55 }
 0x1d1   :  { %v478_v1 = vrot.slane %v462_v60, 4  ;;  %v472_v2 = vrot.slane %v393_v61, 4 }
 0x1d2   :  { %v467_v3 = vmax.f32 %v391_v57, %v466_v63  ;;  %v484_v4 = vrot.slane %v464_v0, 4 }
 0x1d3   :  { %v479_v5 = vmax.f32 %v462_v60, %v478_v1  ;;  %v473_v6 = vmax.f32 %v393_v61, %v472_v2 }
 0x1d4   :  { %v468_v7 = vrot.slane %v467_v3, 2  ;;  %v485_v8 = vmax.f32 %v464_v0, %v484_v4 }
 0x1d5   :  { %v480_v9 = vrot.slane %v479_v5, 2  ;;  %v474_v10 = vrot.slane %v473_v6, 2 }
 0x1d6   :  { %v469_v11 = vmax.f32 %v467_v3, %v468_v7  ;;  %v486_v12 = vrot.slane %v485_v8, 2 }
 0x1d7   :  { %v481_v13 = vmax.f32 %v479_v5, %v480_v9  ;;  %v475_v14 = vmax.f32 %v473_v6, %v474_v10 }
 0x1d8   :  { %v470_v15 = vrot.slane %v469_v11, 1  ;;  %v487_v16 = vmax.f32 %v485_v8, %v486_v12 }
 0x1d9   :  { %v482_v17 = vrot.slane %v481_v13, 1  ;;  %v476_v18 = vrot.slane %v475_v14, 1 }
 0x1da   :  { %v471_v19 = vmax.f32 %v469_v11, %v470_v15  ;;  %v488_v20 = vrot.slane %v487_v16, 1 }
 0x1db   :  { %v483_v21 = vmax.f32 %v481_v13, %v482_v17  ;;  %v477_v22 = vmax.f32 %v475_v14, %v476_v18 }
 0x1dc   :  { %v490_v23 = vsub.f32 %v391_v57, %v471_v19  ;;  %v489_v24 = vmax.f32 %v487_v16, %v488_v20 }
 0x1dd   :  { %v492_v25 = vsub.f32 %v462_v60, %v483_v21  ;;  %v491_v26 = vsub.f32 %v393_v61, %v477_v22 }
 0x1de   :  { %v494_v27 = vmul.f32 1.442695, %v490_v23  ;;  %v493_v28 = vsub.f32 %v464_v0, %v489_v24 }
 0x1df   :  { %v498_v29 = vmul.f32 1.442695, %v492_v25  ;;  %v496_v30 = vmul.f32 1.442695, %v491_v26 }
 0x1e0   :  { %621 = vpow2.f32 %v494_v27  ;;  %v500_v31 = vmul.f32 1.442695, %v493_v28 }
 0x1e1   :  { %623 = vpow2.f32 %v498_v29 }
 0x1e2   :  { %625 = vpow2.f32 %v496_v30 }
 0x1e3   :  { %627 = vpow2.f32 %v500_v31 }
 0x1ea   :  { %v622_v32 = vpop.eup %621 }
 0x1eb   :  { %v624_v33 = vpop.eup %623  ;;  %v502_v34 = vrot.slane %v622_v32, 4 }
 0x1ec   :  { %v626_v35 = vpop.eup %625  ;;  %v514_v36 = vrot.slane %v624_v33, 4 }
 0x1ed   :  { %v628_v37 = vpop.eup %627  ;;  %v503_v38 = vadd.f32 %v622_v32, %v502_v34  ;;  %v508_v39 = vrot.slane %v626_v35, 4 }
 0x1ee   :  { %v515_v40 = vadd.f32 %v624_v33, %v514_v36  ;;  %v520_v41 = vrot.slane %v628_v37, 4 }
 0x1ef   :  { %v504_v42 = vrot.slane %v503_v38, 2  ;;  %v509_v43 = vadd.f32 %v626_v35, %v508_v39 }
 0x1f0   :  { %v516_v44 = vrot.slane %v515_v40, 2  ;;  %v521_v45 = vadd.f32 %v628_v37, %v520_v41 }
 0x1f1   :  { %v505_v46 = vadd.f32 %v504_v42, %v503_v38  ;;  %v510_v47 = vrot.slane %v509_v43, 2 }
 0x1f2   :  { %v517_v48 = vadd.f32 %v516_v44, %v515_v40  ;;  %v522_v49 = vrot.slane %v521_v45, 2 }
 0x1f3   :  { %v506_v50 = vrot.slane %v505_v46, 1  ;;  %v511_v51 = vadd.f32 %v510_v47, %v509_v43 }
 0x1f4   :  { %v518_v52 = vrot.slane %v517_v48, 1  ;;  %v523_v53 = vadd.f32 %v522_v49, %v521_v45 }
 0x1f5   :  { %v507_v54 = vadd.f32 %v506_v50, %v505_v46  ;;  %v512_v55 = vrot.slane %v511_v51, 1 }
 0x1f6   :  { %v519_v56 = vadd.f32 %v518_v52, %v517_v48  ;;  %v524_v57 = vrot.slane %v523_v53, 1 }
 0x1f7   :  { %v513_v58 = vadd.f32 %v512_v55, %v511_v51  ;;  %629 = vrcp.f32 %v507_v54 }
 0x1f8   :  { %v525_v59 = vadd.f32 %v524_v57, %v523_v53  ;;  %631 = vrcp.f32 %v519_v56 }
 0x1f9   :  { %633 = vrcp.f32 %v513_v58 }
 0x1fa   :  { %635 = vrcp.f32 %v525_v59 }
 0x201   :  { %v630_v60 = vpop.eup %629 }
 0x202   :  { %v632_v61 = vpop.eup %631  ;;  %v527_v62 = vmul.f32 %v630_v60, %v622_v32 }
 0x203   :  { %v634_v63 = vpop.eup %633  ;;  %v531_v0 = vmul.f32 %v632_v61, %v624_v33 }
 0x204   :  { %v636_v1 = vpop.eup %635  ;;  %v529_v2 = vmul.f32 %v634_v63, %v626_v35  ;;  %534 = vst [vmem:[#allocation2] sm:$0xff] %v527_v62 }
 0x205   :  { %v533_v3 = vmul.f32 %v636_v1, %v628_v37  ;;  %536 = vst [vmem:[#allocation2 + $0x10] sm:$0xff] %v531_v0 }
 0x206   :  { %535 = vst [vmem:[#allocation2 + $0x8] sm:$0xff] %v529_v2 }
 0x207   :  { %537 = vst [vmem:[#allocation2 + $0x18] sm:$0xff] %v533_v3 }
 0x208   :  { %648 = shalt.err (!%p645_p4)
}
 0x209   :  { %s649_s20 = scalar_lea.hbm %s850_s5, 512 }
 0x20a   :  { %p650_p5 = scmp.ne.s32.totalorder %s850_s5, %s649_s20  ;;  %p653_p6 = scmp.lt.u32.totalorder %s649_s20, %s850_s5 }
 0x20c   :  { %p655_p7 = pnand %p653_p6, %p650_p5 }
 0x20e   :  { %658 = shalt.err (!%p655_p7)
}
 0x20f   :  { %559 = dma.vmem_to_hbm [thread:$0]  %s557_s16, 512, %s850_s5, [#allocation3]  }
 0x210   :  { %659 = dma.done.wait [#allocation3], 512  }
 0x211   :  { %660 = vsyncadd [#allocation3], 4294966784 }
 0x212   :  { %567 = vsyncpa [#allocation3], 1 }

</bundles_post_ra>
